<compile_context>
chip_gen: v7x
topology: tpu7x:2x2x1
jax: 0.10.0
libtpu: 0.0.40
codegen_flags: <defaults>
</compile_context>

<pallas_src>
import functools
import math

import jax
import jax.numpy as jnp
from jax.experimental import pallas as pl
from jax.experimental.pallas import tpu as pltpu

_NEG_INF_FILL = -1000000000.0  # Python float -> jaxpr literal (not a captured const)


def _flash_body(q_ref, k_ref, v_ref, mask_ref, o_ref,
                q_sc, m_sc, l_sc, acc_sc, *, scale, exact_recip):
    """One (head-group, q_tile, kv_tile) grid step of online-softmax attention."""
    kv_idx = pl.program_id(2)

    @pl.when(kv_idx == 0)
    def _init():
        # Scale folded into Q once per Q tile (hoisted out of the KV loop).
        q_sc[...] = q_ref[0] * scale
        m_sc[...] = jnp.full_like(m_sc, -jnp.inf)
        l_sc[...] = jnp.zeros_like(l_sc)
        acc_sc[...] = jnp.zeros_like(acc_sc)

    q = q_sc[...]            # (Hblk, tq, D), scaled, native dtype
    k = k_ref[0]             # (Hblk, tk, D)
    v = v_ref[0]             # (Hblk, tk, D)

    # Batched QK^T contracting the last dims -> no physical K transpose.
    # TODO(synk): optionally cast f32 q/k (and p) to bf16 here for 2-3x MXU
    # throughput (largest win on v5e); kept exact to match tight tolerances.
    s = jnp.einsum("hqd,hkd->hqk", q, k,
                   preferred_element_type=jnp.float32)    # (Hblk, tq, tk) f32

    if mask_ref is not None:
        # Mask streamed in its original dtype (single use -> no conversion pass).
        s = jnp.where(mask_ref[0] == 0, _NEG_INF_FILL, s)

    m_prev = m_sc[...]                                     # (Hblk, tq, 1)
    m_new = jnp.maximum(m_prev, jnp.max(s, axis=-1, keepdims=True))
    alpha = jnp.exp(m_prev - m_new)
    p = jnp.exp(s - m_new)                                 # (Hblk, tq, tk)

    l_sc[...] = alpha * l_sc[...] + jnp.sum(p, axis=-1, keepdims=True)
    acc_sc[...] = alpha * acc_sc[...] + jnp.einsum(
        "hqk,hkd->hqd", p.astype(v.dtype), v,
        preferred_element_type=jnp.float32)                # (Hblk, tq, D) f32
    m_sc[...] = m_new

    @pl.when(kv_idx == pl.num_programs(2) - 1)
    def _finalize():
        l = l_sc[...]
        if exact_recip:
            out = acc_sc[...] / l                          # exact for f32 outputs
        else:
            out = acc_sc[...] * pl.reciprocal(l, approx=True)  # EUP slot
        o_ref[0] = out.astype(o_ref.dtype)


def _kernel_nomask(q_ref, k_ref, v_ref, o_ref, q_sc, m_sc, l_sc, acc_sc,
                   *, scale, exact_recip):
    _flash_body(q_ref, k_ref, v_ref, None, o_ref, q_sc, m_sc, l_sc, acc_sc,
                scale=scale, exact_recip=exact_recip)


def _kernel_mask(q_ref, k_ref, v_ref, mask_ref, o_ref, q_sc, m_sc, l_sc,
                 acc_sc, *, scale, exact_recip):
    _flash_body(q_ref, k_ref, v_ref, mask_ref, o_ref, q_sc, m_sc, l_sc, acc_sc,
                scale=scale, exact_recip=exact_recip)


def _pick_tile(S, preferred):
    """Largest tile <= preferred that is a multiple of 128 and divides S,
    falling back to the full axis (always a legal block size)."""
    t = preferred
    while t >= 128:
        if S % t == 0:
            return t
        t //= 2
    return S


def _pick_head_block(H, D, max_hblk=8):
    """Pack enough heads per grid step so Hblk*D >= 128 when possible."""
    target = min(max_hblk, max(1, -(-128 // D)))   # ceil(128 / D), capped
    for hb in range(min(target, H), 0, -1):
        if H % hb == 0:
            return hb
    return 1


def scaled_dot_product_attention(q, k, v, mask=None, *, dk=None,
                                 q_tile=512, kv_tile=256):
    """q, k, v: [B, H, S, D].  mask: optional [B, H, S, S] (0 = masked out)."""
    B, H, S, D = q.shape
    if dk is None:
        dk = D
    scale = 1.0 / math.sqrt(dk)

    hblk = _pick_head_block(H, D)
    G = (B * H) // hblk
    tq = _pick_tile(S, q_tile)
    tk = _pick_tile(S, kv_tile)
    grid = (G, S // tq, S // tk)
    # TODO(synk): on v7x (2 TensorCores) ensure G * (S // tq) >= 2 and evenly
    # splittable; for tiny BH*S prefer a smaller tq over starving one core.

    q4 = q.reshape(G, hblk, S, D)
    k4 = k.reshape(G, hblk, S, D)
    v4 = v.reshape(G, hblk, S, D)

    q_spec = pl.BlockSpec((1, hblk, tq, D), lambda g, qi, ki: (g, 0, qi, 0))
    kv_spec = pl.BlockSpec((1, hblk, tk, D), lambda g, qi, ki: (g, 0, ki, 0))
    o_spec = pl.BlockSpec((1, hblk, tq, D), lambda g, qi, ki: (g, 0, qi, 0))
    out_shape = jax.ShapeDtypeStruct((G, hblk, S, D), q.dtype)

    itemsize = jnp.dtype(q.dtype).itemsize
    exact_recip = jnp.dtype(q.dtype) == jnp.float32

    in_specs = [q_spec, kv_spec, kv_spec]
    inputs = [q4, k4, v4]
    mask_itemsize = 0
    if mask is not None:
        mask4 = jnp.broadcast_to(mask, (B, H, S, S)).reshape(G, hblk, S, S)
        mask_itemsize = jnp.dtype(mask4.dtype).itemsize
        in_specs.append(pl.BlockSpec((1, hblk, tq, tk),
                                     lambda g, qi, ki: (g, 0, qi, ki)))
        inputs.append(mask4)
        kernel = functools.partial(_kernel_mask, scale=scale,
                                   exact_recip=exact_recip)
    else:
        kernel = functools.partial(_kernel_nomask, scale=scale,
                                   exact_recip=exact_recip)
    # TODO(synk): for causal/structured masks, prefetch a block-mask table
    # (PrefetchScalarGridSpec) and skip fully-masked KV tiles instead of
    # streaming the O(B*H*S^2) dense mask.

    scratch_shapes = [
        pltpu.VMEM((hblk, tq, D), q.dtype),       # scaled Q (hoisted)
        pltpu.VMEM((hblk, tq, 1), jnp.float32),   # running max
        pltpu.VMEM((hblk, tq, 1), jnp.float32),   # running denominator
        pltpu.VMEM((hblk, tq, D), jnp.float32),   # output accumulator
    ]

    # VMEM working set: double-buffered pipelined blocks + scratch + temporaries.
    blk_bytes = (hblk * tq * D + 2 * hblk * tk * D + hblk * tq * D) * itemsize
    blk_bytes += hblk * tq * tk * mask_itemsize
    scratch_bytes = hblk * tq * D * (itemsize + 4) + 2 * hblk * tq * 4
    temp_bytes = 3 * hblk * tq * tk * 4            # s / p / select temporaries
    need = 2 * blk_bytes + scratch_bytes + temp_bytes
    vmem_limit = int(min(max(2 * need, 16 * 1024 * 1024), 40 * 1024 * 1024))

    compiler_params = pltpu.CompilerParams(
        dimension_semantics=("parallel", "parallel", "arbitrary"),
        vmem_limit_bytes=vmem_limit,
    )
    cost = pl.CostEstimate(
        flops=4 * B * H * S * S * D,
        transcendentals=B * H * S * S,
        bytes_accessed=4 * B * H * S * D * itemsize + B * H * S * S * mask_itemsize,
    )

    out = pl.pallas_call(
        kernel,
        out_shape=out_shape,
        grid=grid,
        in_specs=in_specs,
        out_specs=o_spec,
        scratch_shapes=scratch_shapes,
        compiler_params=compiler_params,
        cost_estimate=cost,
    )(*inputs)

    return out.reshape(B, H, S, D)


def _reference(q, k, v, mask=None, dk=None):
    if dk is None:
        dk = q.shape[-1]
    s = jnp.einsum("bhqd,bhkd->bhqk",
                   q.astype(jnp.float32), k.astype(jnp.float32)) / math.sqrt(dk)
    if mask is not None:
        s = jnp.where(mask == 0, -1000000000.0, s)
    p = jax.nn.softmax(s, axis=-1)
    return jnp.einsum("bhqk,bhkd->bhqd", p, v.astype(jnp.float32)).astype(q.dtype)


if __name__ == "__main__":
    B, H, S, D = 2, 2, 8, 32  # batch, heads, seq, head_dim (dk = 32)
    key = jax.random.PRNGKey(0)
    kq, kk, kv, km = jax.random.split(key, 4)

    q = jax.random.normal(kq, (B, H, S, D), dtype=jnp.float32)
    k = jax.random.normal(kk, (B, H, S, D), dtype=jnp.float32)
    v = jax.random.normal(kv, (B, H, S, D), dtype=jnp.float32)
    mask = (jax.random.uniform(km, (B, H, S, S)) > 0.3).astype(jnp.float32)

    # no-mask path
    out = jax.block_until_ready(scaled_dot_product_attention(q, k, v))
    ref = _reference(q, k, v)
    assert jnp.allclose(out, ref, atol=2e-3, rtol=2e-3), "no-mask mismatch"

    # masked path
    out_m = jax.block_until_ready(scaled_dot_product_attention(q, k, v, mask))
    ref_m = _reference(q, k, v, mask)
    assert jnp.allclose(out_m, ref_m, atol=2e-3, rtol=2e-3), "mask mismatch"

    print("KERNEL_OK")
</pallas_src>

<mosaic_0001>
module attributes {stable_mosaic.version = 11 : i64} {
  func.func @_kernel_nomask(%arg0: i32, %arg1: i32, %arg2: i32, %arg3: memref<1x2x8x32xf32, #tpu.memory_space<vmem>>, %arg4: memref<1x2x8x32xf32, #tpu.memory_space<vmem>>, %arg5: memref<1x2x8x32xf32, #tpu.memory_space<vmem>>, %arg6: memref<1x2x8x32xf32, #tpu.memory_space<vmem>>, %arg7: memref<2x8x32xf32, #tpu.memory_space<vmem>>, %arg8: memref<2x8x1xf32, #tpu.memory_space<vmem>>, %arg9: memref<2x8x1xf32, #tpu.memory_space<vmem>>, %arg10: memref<2x8x32xf32, #tpu.memory_space<vmem>>) attributes {dimension_semantics = [#tpu.dimension_semantics<parallel>, #tpu.dimension_semantics<parallel>, #tpu.dimension_semantics<arbitrary>], iteration_bounds = array<i64: 2, 1, 1>, scalar_prefetch = 0 : i64, scratch_operands = 4 : i64, tpu.core_type = #tpu.core_type<tc>, window_params = [{transform_indices = @transform_0, window_bounds = array<i64: 1, 2, 8, 32>}, {transform_indices = @transform_1, window_bounds = array<i64: 1, 2, 8, 32>}, {transform_indices = @transform_2, window_bounds = array<i64: 1, 2, 8, 32>}, {transform_indices = @transform_3, window_bounds = array<i64: 1, 2, 8, 32>}]} {
    %c0_i32 = arith.constant 0 : i32
    %0 = arith.cmpi eq, %arg2, %c0_i32 : i32
    %1 = arith.extui %0 : i1 to i32
    %c0_i32_0 = arith.constant 0 : i32
    %2 = arith.cmpi ne, %1, %c0_i32_0 : i32
    scf.if %2 {
      %c0_34 = arith.constant 0 : index
      %c0_35 = arith.constant 0 : index
      %c0_36 = arith.constant 0 : index
      %c0_37 = arith.constant 0 : index
      %34 = vector.load %arg3[%c0_34, %c0_35, %c0_36, %c0_37] : memref<1x2x8x32xf32, #tpu.memory_space<vmem>>, vector<1x2x8x32xf32>
      %35 = vector.shape_cast %34 : vector<1x2x8x32xf32> to vector<2x8x32xf32>
      %cst_38 = arith.constant 0.176776692 : f32
      %36 = vector.broadcast %cst_38 : f32 to vector<2x8x32xf32>
      %37 = arith.mulf %35, %36 : vector<2x8x32xf32>
      %c0_39 = arith.constant 0 : index
      %c0_40 = arith.constant 0 : index
      %c0_41 = arith.constant 0 : index
      %38 = vector.load %arg7[%c0_39, %c0_40, %c0_41] : memref<2x8x32xf32, #tpu.memory_space<vmem>>, vector<2x8x32xf32>
      tpu.vector_store %arg7[%c0_39, %c0_40, %c0_41], %37 {strides = array<i32>} : memref<2x8x32xf32, #tpu.memory_space<vmem>>, vector<2x8x32xf32>,
      %cst_42 = arith.constant 0xFF800000 : f32
      %39 = vector.broadcast %cst_42 : f32 to vector<2x8x1xf32>
      %c0_43 = arith.constant 0 : index
      %c0_44 = arith.constant 0 : index
      %c0_45 = arith.constant 0 : index
      %40 = vector.load %arg8[%c0_43, %c0_44, %c0_45] : memref<2x8x1xf32, #tpu.memory_space<vmem>>, vector<2x8x1xf32>
      tpu.vector_store %arg8[%c0_43, %c0_44, %c0_45], %39 {strides = array<i32>} : memref<2x8x1xf32, #tpu.memory_space<vmem>>, vector<2x8x1xf32>,
      %cst_46 = arith.constant 0.000000e+00 : f32
      %41 = vector.broadcast %cst_46 : f32 to vector<2x8x1xf32>
      %c0_47 = arith.constant 0 : index
      %c0_48 = arith.constant 0 : index
      %c0_49 = arith.constant 0 : index
      %42 = vector.load %arg9[%c0_47, %c0_48, %c0_49] : memref<2x8x1xf32, #tpu.memory_space<vmem>>, vector<2x8x1xf32>
      tpu.vector_store %arg9[%c0_47, %c0_48, %c0_49], %41 {strides = array<i32>} : memref<2x8x1xf32, #tpu.memory_space<vmem>>, vector<2x8x1xf32>,
      %cst_50 = arith.constant 0.000000e+00 : f32
      %43 = vector.broadcast %cst_50 : f32 to vector<2x8x32xf32>
      %c0_51 = arith.constant 0 : index
      %c0_52 = arith.constant 0 : index
      %c0_53 = arith.constant 0 : index
      %44 = vector.load %arg10[%c0_51, %c0_52, %c0_53] : memref<2x8x32xf32, #tpu.memory_space<vmem>>, vector<2x8x32xf32>
      tpu.vector_store %arg10[%c0_51, %c0_52, %c0_53], %43 {strides = array<i32>} : memref<2x8x32xf32, #tpu.memory_space<vmem>>, vector<2x8x32xf32>,
    } else {
    }
    %c0 = arith.constant 0 : index
    %c0_1 = arith.constant 0 : index
    %c0_2 = arith.constant 0 : index
    %3 = vector.load %arg7[%c0, %c0_1, %c0_2] : memref<2x8x32xf32, #tpu.memory_space<vmem>>, vector<2x8x32xf32>
    %c0_3 = arith.constant 0 : index
    %c0_4 = arith.constant 0 : index
    %c0_5 = arith.constant 0 : index
    %c0_6 = arith.constant 0 : index
    %4 = vector.load %arg4[%c0_3, %c0_4, %c0_5, %c0_6] : memref<1x2x8x32xf32, #tpu.memory_space<vmem>>, vector<1x2x8x32xf32>
    %5 = vector.shape_cast %4 : vector<1x2x8x32xf32> to vector<2x8x32xf32>
    %c0_7 = arith.constant 0 : index
    %c0_8 = arith.constant 0 : index
    %c0_9 = arith.constant 0 : index
    %c0_10 = arith.constant 0 : index
    %6 = vector.load %arg5[%c0_7, %c0_8, %c0_9, %c0_10] : memref<1x2x8x32xf32, #tpu.memory_space<vmem>>, vector<1x2x8x32xf32>
    %7 = vector.shape_cast %6 : vector<1x2x8x32xf32> to vector<2x8x32xf32>
    "tpu.trace_start"() <{level = 10 : i32, message = "hqd,hkd->hqk"}> : () -> ()
    %cst = arith.constant dense<0.000000e+00> : vector<2x8x8xf32>
    %8 = tpu.matmul %3, %5, %cst {dimension_numbers = #tpu.dot_dimension_numbers<[2], [2], [1], [1], [0, 0, 0, 1, 1, 1], [0], [0]>} : vector<2x8x32xf32>, vector<2x8x32xf32>, vector<2x8x8xf32> -> vector<2x8x8xf32>
    "tpu.trace_stop"() : () -> ()
    %c0_11 = arith.constant 0 : index
    %c0_12 = arith.constant 0 : index
    %c0_13 = arith.constant 0 : index
    %9 = vector.load %arg8[%c0_11, %c0_12, %c0_13] : memref<2x8x1xf32, #tpu.memory_space<vmem>>, vector<2x8x1xf32>
    %cst_14 = arith.constant dense<0xFF800000> : vector<2x8xf32>
    %10 = vector.multi_reduction <maximumf>, %8, %cst_14 [2] : vector<2x8x8xf32> to vector<2x8xf32>
    %11 = vector.shape_cast %10 : vector<2x8xf32> to vector<2x8x1xf32>
    %12 = arith.maximumf %9, %11 : vector<2x8x1xf32>
    %13 = arith.subf %9, %12 : vector<2x8x1xf32>
    %14 = math.exp %13 : vector<2x8x1xf32>
    %15 = vector.broadcast %12 : vector<2x8x1xf32> to vector<2x8x8xf32>
    %16 = arith.subf %8, %15 : vector<2x8x8xf32>
    %17 = math.exp %16 : vector<2x8x8xf32>
    %c0_15 = arith.constant 0 : index
    %c0_16 = arith.constant 0 : index
    %c0_17 = arith.constant 0 : index
    %18 = vector.load %arg9[%c0_15, %c0_16, %c0_17] : memref<2x8x1xf32, #tpu.memory_space<vmem>>, vector<2x8x1xf32>
    %19 = arith.mulf %14, %18 : vector<2x8x1xf32>
    %cst_18 = arith.constant dense<0.000000e+00> : vector<2x8xf32>
    %20 = vector.multi_reduction <add>, %17, %cst_18 [2] : vector<2x8x8xf32> to vector<2x8xf32>
    %21 = vector.shape_cast %20 : vector<2x8xf32> to vector<2x8x1xf32>
    %22 = arith.addf %19, %21 : vector<2x8x1xf32>
    %c0_19 = arith.constant 0 : index
    %c0_20 = arith.constant 0 : index
    %c0_21 = arith.constant 0 : index
    %23 = vector.load %arg9[%c0_19, %c0_20, %c0_21] : memref<2x8x1xf32, #tpu.memory_space<vmem>>, vector<2x8x1xf32>
    tpu.vector_store %arg9[%c0_19, %c0_20, %c0_21], %22 {strides = array<i32>} : memref<2x8x1xf32, #tpu.memory_space<vmem>>, vector<2x8x1xf32>,
    %c0_22 = arith.constant 0 : index
    %c0_23 = arith.constant 0 : index
    %c0_24 = arith.constant 0 : index
    %24 = vector.load %arg10[%c0_22, %c0_23, %c0_24] : memref<2x8x32xf32, #tpu.memory_space<vmem>>, vector<2x8x32xf32>
    %25 = vector.broadcast %14 : vector<2x8x1xf32> to vector<2x8x32xf32>
    %26 = arith.mulf %25, %24 : vector<2x8x32xf32>
    "tpu.trace_start"() <{level = 10 : i32, message = "hqk,hkd->hqd"}> : () -> ()
    %cst_25 = arith.constant dense<0.000000e+00> : vector<2x8x32xf32>
    %27 = tpu.matmul %17, %7, %cst_25 {dimension_numbers = #tpu.dot_dimension_numbers<[2], [1], [1], [2], [0, 0, 0, 1, 1, 2], [0], [0]>} : vector<2x8x8xf32>, vector<2x8x32xf32>, vector<2x8x32xf32> -> vector<2x8x32xf32>
    "tpu.trace_stop"() : () -> ()
    %28 = arith.addf %26, %27 : vector<2x8x32xf32>
    %c0_26 = arith.constant 0 : index
    %c0_27 = arith.constant 0 : index
    %c0_28 = arith.constant 0 : index
    %29 = vector.load %arg10[%c0_26, %c0_27, %c0_28] : memref<2x8x32xf32, #tpu.memory_space<vmem>>, vector<2x8x32xf32>
    tpu.vector_store %arg10[%c0_26, %c0_27, %c0_28], %28 {strides = array<i32>} : memref<2x8x32xf32, #tpu.memory_space<vmem>>, vector<2x8x32xf32>,
    %c0_29 = arith.constant 0 : index
    %c0_30 = arith.constant 0 : index
    %c0_31 = arith.constant 0 : index
    %30 = vector.load %arg8[%c0_29, %c0_30, %c0_31] : memref<2x8x1xf32, #tpu.memory_space<vmem>>, vector<2x8x1xf32>
    tpu.vector_store %arg8[%c0_29, %c0_30, %c0_31], %12 {strides = array<i32>} : memref<2x8x1xf32, #tpu.memory_space<vmem>>, vector<2x8x1xf32>,
    %c0_i32_32 = arith.constant 0 : i32
    %31 = arith.cmpi eq, %arg2, %c0_i32_32 : i32
    %32 = arith.extui %31 : i1 to i32
    %c0_i32_33 = arith.constant 0 : i32
    %33 = arith.cmpi ne, %32, %c0_i32_33 : i32
    scf.if %33 {
      %c0_34 = arith.constant 0 : index
      %c0_35 = arith.constant 0 : index
      %c0_36 = arith.constant 0 : index
      %34 = vector.load %arg9[%c0_34, %c0_35, %c0_36] : memref<2x8x1xf32, #tpu.memory_space<vmem>>, vector<2x8x1xf32>
      %c0_37 = arith.constant 0 : index
      %c0_38 = arith.constant 0 : index
      %c0_39 = arith.constant 0 : index
      %35 = vector.load %arg10[%c0_37, %c0_38, %c0_39] : memref<2x8x32xf32, #tpu.memory_space<vmem>>, vector<2x8x32xf32>
      %36 = vector.broadcast %34 : vector<2x8x1xf32> to vector<2x8x32xf32>
      %37 = arith.divf %35, %36 : vector<2x8x32xf32>
      %c0_40 = arith.constant 0 : index
      %c0_41 = arith.constant 0 : index
      %c0_42 = arith.constant 0 : index
      %c0_43 = arith.constant 0 : index
      %38 = vector.load %arg6[%c0_40, %c0_41, %c0_42, %c0_43] : memref<1x2x8x32xf32, #tpu.memory_space<vmem>>, vector<1x2x8x32xf32>
      %39 = vector.shape_cast %38 : vector<1x2x8x32xf32> to vector<2x8x32xf32>
      %40 = vector.shape_cast %37 : vector<2x8x32xf32> to vector<1x2x8x32xf32>
      tpu.vector_store %arg6[%c0_40, %c0_41, %c0_42, %c0_43], %40 {strides = array<i32>} : memref<1x2x8x32xf32, #tpu.memory_space<vmem>>, vector<1x2x8x32xf32>,
    } else {
    }
    return
  }
  func.func @transform_0(%arg0: i32, %arg1: i32, %arg2: i32) -> (i32, i32, i32, i32) {
    %c0_i32 = arith.constant 0 : i32
    %c0_i32_0 = arith.constant 0 : i32
    %c0_i32_1 = arith.constant 0 : i32
    return %arg0, %c0_i32, %arg1, %c0_i32_0 : i32, i32, i32, i32
  }
  func.func @transform_1(%arg0: i32, %arg1: i32, %arg2: i32) -> (i32, i32, i32, i32) {
    %c0_i32 = arith.constant 0 : i32
    %c0_i32_0 = arith.constant 0 : i32
    %c0_i32_1 = arith.constant 0 : i32
    return %arg0, %c0_i32, %arg2, %c0_i32_0 : i32, i32, i32, i32
  }
  func.func @transform_2(%arg0: i32, %arg1: i32, %arg2: i32) -> (i32, i32, i32, i32) {
    %c0_i32 = arith.constant 0 : i32
    %c0_i32_0 = arith.constant 0 : i32
    %c0_i32_1 = arith.constant 0 : i32
    return %arg0, %c0_i32, %arg2, %c0_i32_0 : i32, i32, i32, i32
  }
  func.func @transform_3(%arg0: i32, %arg1: i32, %arg2: i32) -> (i32, i32, i32, i32) {
    %c0_i32 = arith.constant 0 : i32
    %c0_i32_0 = arith.constant 0 : i32
    %c0_i32_1 = arith.constant 0 : i32
    return %arg0, %c0_i32, %arg1, %c0_i32_0 : i32, i32, i32, i32
  }
}

</mosaic_0001>

<bundles_post_ra>
// kernel: tpu_custom_call.1
= control target key start
LH: loop header
LB: loop body
LE: loop exit
PB: predicated region body
PF: predicated region fallthrough
CT: control target
= control target key end

     0   :  { %s1539_s0 = inlined_call_operand.hbm [shape: f32[2,2,8,32], index: 0, kind: input, shape index: {}]   ;;  %s1540_s1 = inlined_call_operand.hbm [shape: f32[2,2,8,32], index: 1, kind: input, shape index: {}]   ;;  %s1541_s2 = inlined_call_operand.hbm [shape: f32[2,2,8,32], index: 2, kind: input, shape index: {}]   ;;  %s1542_s3 = inlined_call_operand.hbm [shape: f32[2,2,8,32], index: 3, kind: output, shape index: {}]  }
   0x1   :  { %1552 = sst [smem:[#allocation19_spill]] %s1540_s1 }
   0x2   :  { %8 = vsyncpa [#allocation7], 0 }
   0x3   :  { %10 = vsyncpa [#allocation7 + $0x1], 0 }
   0x4   :  { %11 = vsyncpa [#allocation10], 0 }
   0x5   :  { %13 = vsyncpa [#allocation10 + $0x1], 0 }
   0x6   :  { %14 = vsyncpa [#allocation8], 0 }
   0x7   :  { %16 = vsyncpa [#allocation8 + $0x1], 0  ;;  %s1225_s12 = smov 0   ;;  %s1227_s13 = smov 0  }
   0x8   :  { %s1229_s14 = smov 0   ;;  %s1231_s15 = smov 0  }
   0x9   :  { %s1233_s16 = smov 0   ;;  %s1235_s17 = smov 0  }
   0xa LB: > { %1553 = sst [smem:[#allocation16_spill]] %s1187_s16  ;;  %s1256_s18 = sadd.s32 4294967295, %s1191_s17   ;;  %s1191_s17 = sphi %s1235_s17, %s22_s17   ;;  %s1187_s16 = sphi %s1233_s16, %s1576_s16   ;;  %s1183_s15 = sphi %s1231_s15, %s1575_s15   ;;  %s1179_s14 = sphi %s1229_s14, %s1579_s14   ;;  %s1175_s13 = sphi %s1227_s13, %s1578_s13   ;;  %s1171_s12 = sphi %s1225_s12, %s1577_s12  }
   0xb   : > { %s861_s19 = sadd.s32 4294967294, %s1191_s17   ;;  %s41_s20 = sadd.s32 1, %s1187_s16 }
   0xc   : > { %s50_s21 = sadd.s32 1, %s1179_s14  ;;  %p43_p0 = scmp.ge.s32.totalorder %s41_s20, 2 }
   0xd   : > { %p57_p1 = scmp.ne.s32.totalorder %s1179_s14, %s1175_s13  ;;  %p58_p2 = scmp.eq.s32.totalorder %s1191_s17, 0 }
   0xe   : > { %p63_p3 = scmp.ne.s32.totalorder %s1175_s13, %s1171_s12  ;;  %s1581_s20 = smov (%p43_p0, %s41_s20), 0 }
   0xf   : > { %1554 = sst [smem:[#allocation17_spill]] %s1581_s20  ;;  %p1268_p4 = por %p58_p2, %p57_p1 }
  0x10   : > { %p64_p5 = scmp.eq.s32.totalorder %s1256_s18, 0  ;;  %s45_s23 = ssub.s32 %s1187_s16, %s1581_s20 }
  0x11   : > { %p145_p6 = scmp.eq.s32.totalorder %s1256_s18, 1  ;;  %p48_p7 = scmp.eq.s32.totalorder %s45_s23, 0 }
  0x12   : > { %p1276_p8 = por %p64_p5, %p63_p3  ;;  %p151_p10 = scmp.eq.s32.totalorder %s861_s19, 1 }
  0x13   : > { %p1280_p9 = por %p145_p6, %p57_p1  ;;  %p943_p13 = scmp.lt.s32.totalorder %s1191_s17, 2 }
  0x14   : > { %s1556_s24 = scalar_select %p1276_p8, 1, 0 }
  0x15   : > { %s1557_s25 = scalar_select %p1280_p9, 1, 0 }
  0x16   : > { %s1285_s26 = scalar_select %p48_p7, %s1179_s14, %s50_s21  }
  0x17   : > { %p1287_p11 = por %p151_p10, %p63_p3  ;;  %s1545_s28 = sand.u32 1, %s1179_s14  }
  0x18   : > { %1558 = sst [smem:[#allocation18_spill]] %s1285_s26  ;;  %s1296_s29 = sshll.u32 %s1545_s28, 4 }
  0x19   : > { %s1559_s27 = scalar_select %p1287_p11, 1, 0 }
  0x1a   : > { %s1299_s30 = sshll.u32 %s1187_s16, 8  ;;  %p1303_p0 = pnand %p943_p13, %p1268_p4 }
  0x1b   : > { %s193_s5 = sand.u32 1, %s1191_s17   ;;  %s1561_s1 = sld [smem:[#allocation19_spill]] }
  0x1c   : > { %s197_s9 = scalar_lea.vmem [#allocation9], %s1296_s29  ;;  %s1319_s11 = scalar_lea.sflag [#allocation10], %s193_s5 }
  0x1d   : > { %s205_s10 = sshll.u32 %s197_s9, 4  ;;  %p1325_p4 = pneg %p1303_p0  ;;  %s1316_s10 = int_to_ptr.vmem [resolvable:$true] %s205_s10 }
  0x21   : > { %s1312_s8 = scalar_lea.hbm %s1561_s1, %s1299_s30  ;;  %s1020_s6 = scalar_lea.hbm %s1561_s1, 512 }
  0x22   : > { %s1015_s19 = scalar_lea.hbm %s1312_s8, 256  ;;  %p1021_p7 = scmp.lt.u32.totalorder %s1312_s8, %s1561_s1 }
  0x23   : > { %p1016_p3 = scmp.ne.s32.totalorder %s1312_s8, %s1015_s19  ;;  %p1022_p10 = scmp.lt.u32.totalorder %s1020_s6, %s1015_s19 }
  0x24   : > { %p1024_p12 = scmp.lt.u32.totalorder %s1015_s19, %s1312_s8 }
  0x25   : > { %p1018_p5 = pnand %p1325_p4, %p1016_p3  ;;  %p1023_p13 = por %p1022_p10, %p1021_p7 }
  0x27   : > { %p1019_p6 = pneg %p1018_p5  ;;  %p1025_p1 = por %p1024_p12, %p1023_p13 }
  0x29   : > { %p1026_p2 = pnand %p1025_p1, %p1019_p6 }
  0x2b   : > { %1029 = shalt.err (!%p1026_p2)
}
  0x2c   : > { %s1030_s5 = scalar_lea.vmem %s1316_s10, 256  ;;  %s1193_s22 = smov [#allocation9]  }
  0x2d   : > { %p1031_p3 = scmp.ne.s32.totalorder %s1316_s10, %s1030_s5  ;;  %s1035_s23 = sshll.u32 %s1193_s22, 4  ;;  %s1036_s23 = int_to_ptr.vmem [resolvable:$false] %s1035_s23 }
  0x2e   : > { %s1037_s7 = scalar_lea.vmem %s1036_s23, 512  ;;  %p1038_p9 = scmp.lt.s32.totalorder %s1316_s10, %s1036_s23 }
  0x2f   : > { %p1033_p5 = pnand %p1031_p3, %p1325_p4  ;;  %p1039_p8 = scmp.lt.s32.totalorder %s1037_s7, %s1030_s5 }
  0x31   : > { %p1034_p11 = pneg %p1033_p5  ;;  %p1040_p7 = por %p1039_p8, %p1038_p9 }
  0x33   : > { %p1041_p10 = pnand %p1040_p7, %p1034_p11 }
  0x35   : > { %1044 = shalt.err (!%p1041_p10)
}
  0x36   : > { %s1546_s19 = smov 128   ;;  %s1548_s6 = smov 8  }
  0x37   : > { %935 = dma.hbm_to_vmem [thread:$0]  (!%p1303_p0), %s1312_s8, 256, %s1316_s10, %s1319_s11, %s1546_s19, %s1546_s19, %s1548_s6  }
  0x38   : > { %p1563_p8 = scmp.lt.s32.totalorder %s1191_s17, 3  ;;  %p1564_p9 = scmp.ge.s32.totalorder %s1191_s17, 1 }
  0x39   : > { %s1364_s23 = scalar_lea.hbm %s1539_s0, %s1299_s30  ;;  %s175_s7 = scalar_lea.vmem [#allocation6], %s1296_s29 }
  0x3a   : > { %p1356_p11 = pnand %p1564_p9, %p1563_p8  ;;  %s183_s28 = sshll.u32 %s175_s7, 4  ;;  %s1367_s28 = int_to_ptr.vmem [resolvable:$true] %s183_s28 }
  0x3b   : > { %s1373_s19 = scalar_lea.hbm %s1541_s2, %s1299_s30  ;;  %s1566_s6 = sand.u32 1, %s1179_s14  }
  0x3c   : > { %s1565_s9 = scalar_select %p1356_p11, 1, 0 }
  0x3d   : > { %s1377_s1 = scalar_lea.sflag [#allocation7], %s1566_s6  ;;  %s1045_s20 = scalar_lea.hbm %s1364_s23, 256 }
  0x3e   : > { %p1046_p12 = scmp.ne.s32.totalorder %s1364_s23, %s1045_s20  ;;  %s1050_s16 = scalar_lea.hbm %s1539_s0, 512 }
  0x3f   : > { %p1051_p6 = scmp.lt.u32.totalorder %s1364_s23, %s1539_s0  ;;  %p1052_p13 = scmp.lt.u32.totalorder %s1050_s16, %s1045_s20 }
  0x40   : > { %p1048_p1 = pnand %p1046_p12, %p1325_p4  ;;  %p1054_p5 = scmp.lt.u32.totalorder %s1045_s20, %s1364_s23 }
  0x41   : > { %p1053_p3 = por %p1052_p13, %p1051_p6 }
  0x42   : > { %p1049_p2 = pneg %p1048_p1 }
  0x43   : > { %p1055_p7 = por %p1054_p5, %p1053_p3 }
  0x45   : > { %p1056_p10 = pnand %p1055_p7, %p1049_p2 }
  0x47   : > { %1059 = shalt.err (!%p1056_p10)
}
  0x48   : > { %s1060_s30 = scalar_lea.vmem %s1367_s28, 256  ;;  %s1196_s6 = smov [#allocation6]  }
  0x49   : > { %p1061_p8 = scmp.ne.s32.totalorder %s1367_s28, %s1060_s30  ;;  %s1065_s8 = sshll.u32 %s1196_s6, 4  ;;  %s1066_s8 = int_to_ptr.vmem [resolvable:$false] %s1065_s8 }
  0x4a   : > { %s1067_s26 = scalar_lea.vmem %s1066_s8, 512  ;;  %p1068_p1 = scmp.lt.s32.totalorder %s1367_s28, %s1066_s8 }
  0x4b   : > { %p1063_p9 = pnand %p1061_p8, %p1325_p4  ;;  %p1069_p11 = scmp.lt.s32.totalorder %s1067_s26, %s1060_s30 }
  0x4d   : > { %p1064_p12 = pneg %p1063_p9  ;;  %p1070_p6 = por %p1069_p11, %p1068_p1 }
  0x4f   : > { %p1071_p13 = pnand %p1070_p6, %p1064_p12 }
  0x51   : > { %1074 = shalt.err (!%p1071_p13)
}
  0x52   : > { %s1567_s16 = smov 8   ;;  %s1568_s20 = smov 128  }
  0x53   : > { %932 = dma.hbm_to_vmem [thread:$0]  (!%p1303_p0), %s1364_s23, 256, %s1367_s28, %s1377_s1, %s1568_s20, %s1568_s20, %s1567_s16  }
  0x54   : > { %s219_s10 = scalar_lea.vmem [#allocation11], %s1296_s29  ;;  %s1075_s22 = scalar_lea.hbm %s1373_s19, 256 }
  0x55   : > { %s227_s5 = sshll.u32 %s219_s10, 4  ;;  %p1076_p11 = scmp.ne.s32.totalorder %s1373_s19, %s1075_s22  ;;  %s1405_s5 = int_to_ptr.vmem [resolvable:$true] %s227_s5 }
  0x56   : > { %s1080_s6 = scalar_lea.hbm %s1541_s2, 512  ;;  %p1081_p5 = scmp.lt.u32.totalorder %s1373_s19, %s1541_s2 }
  0x57   : > { %p1078_p2 = pnand %p1076_p11, %p1325_p4  ;;  %p1082_p7 = scmp.lt.u32.totalorder %s1080_s6, %s1075_s22 }
  0x58   : > { %p1084_p8 = scmp.lt.u32.totalorder %s1075_s22, %s1373_s19 }
  0x59   : > { %p1079_p3 = pneg %p1078_p2  ;;  %p1083_p10 = por %p1082_p7, %p1081_p5 }
  0x5b   : > { %p1085_p9 = por %p1084_p8, %p1083_p10 }
  0x5d   : > { %p1086_p12 = pnand %p1085_p9, %p1079_p3 }
  0x5f   : > { %1089 = shalt.err (!%p1086_p12)
}
  0x60   : > { %s1090_s1 = scalar_lea.vmem %s1405_s5, 256  ;;  %s1197_s28 = smov [#allocation11]  }
  0x61   : > { %p1091_p1 = scmp.ne.s32.totalorder %s1405_s5, %s1090_s1  ;;  %s1095_s29 = sshll.u32 %s1197_s28, 4  ;;  %s1096_s29 = int_to_ptr.vmem [resolvable:$false] %s1095_s29 }
  0x62   : > { %s1097_s23 = scalar_lea.vmem %s1096_s29, 512  ;;  %p1098_p11 = scmp.lt.s32.totalorder %s1405_s5, %s1096_s29 }
  0x63   : > { %p1093_p6 = pnand %p1091_p1, %p1325_p4  ;;  %p1099_p2 = scmp.lt.s32.totalorder %s1097_s23, %s1090_s1 }
  0x65   : > { %p1094_p13 = pneg %p1093_p6  ;;  %p1100_p5 = por %p1099_p2, %p1098_p11 }
  0x67   : > { %p1101_p7 = pnand %p1100_p5, %p1094_p13 }
  0x69   : > { %1104 = shalt.err (!%p1101_p7)
}
  0x6a   : > { %938 = dma.hbm_to_vmem [thread:$0]  (!%p1303_p0), %s1373_s19, 256, %s1405_s5, %s1319_s11, %s1568_s20, %s1568_s20, %s1567_s16  }
  0x6b   : > { %p1569_p4 = scmp.ne.s32.totalorder %s1565_s9, 0 }
  0x6c   : > { %s1435_s21 = sand.u32 (!%p1569_p4), 1, %s1175_s13   ;;  %p1570_p3 = scmp.ne.s32.totalorder (!%p1569_p4), %s1556_s24, 0 }
  0x6d   : > { %239 = sbr.rel (%p1569_p4) target bundleno = 945 (0x3b1), region = 32  ;;  %s1438_s10 = sshll.u32 (!%p1569_p4), %s1435_s21, 4 }
  0x6e   : > { %s242_s4 = scalar_lea.sflag (!%p1569_p4), [#allocation7], %s1435_s21  ;;  %s245_s22 = scalar_lea.vmem (!%p1569_p4), [#allocation6], %s1438_s10 }
  0x74   : > { %1158 = dma.done.wait (%p1570_p3), %s242_s4, 256  }
  0x75   : > { %1160 = vsyncadd (%p1570_p3), %s242_s4, 4294967040  ;;  %s250_s11 = sand.u32 1, %s1256_s18   ;;  %s254_s9 = scalar_lea.vmem [#allocation9], %s1438_s10 }
  0x76   : > { %s251_s19 = scalar_lea.sflag [#allocation10], %s250_s11 }
  0x77   : > { %1162 = dma.done.wait (%p1570_p3), %s251_s19, 512  }
  0x78   : > { %1164 = vsyncadd (%p1570_p3), %s251_s19, 4294966784  ;;  %vm304_vm0 = vcmask 261120   ;;  %v1198_v0 = vmov 0.0   ;;  %vm1199_vm1 = vmmov 0   ;;  %v316_v1 = vld [vmem:[%s254_s9] sm:$0xff]  ;;  %v317_v3 = vld [vmem:[%s254_s9 + $0x8] sm:$0xff] }
  0x79   : > { %901 = vmatprep.subr.mxu0 %v1198_v0  ;;  %312 = vst.msk [vmem:[#allocation5] sm:$0xff] %vm304_vm0, %v1198_v0  ;;  %313 = vst.msk [vmem:[#allocation5 + $0x8] sm:$0xff] %vm304_vm0, %v1198_v0  ;;  %903 = vmatprep.mubr.msk.f32.mxu0 %vm1199_vm1, %v1198_v0  ;;  %v300_v2 = vld [vmem:[%s245_s22] sm:$0xff]  ;;  %v301_v5 = vld [vmem:[%s245_s22 + $0x8] sm:$0xff]  ;;  %vm307_vm2 = vcmask 7168   ;;  %v1200_v9 = vmov -inf  }
  0x7a   : > { %906 = vmatprep.subr.mxu1 %v1198_v0  ;;  %908 = vmatprep.mubr.msk.f32.mxu1 %vm1199_vm1, %v1198_v0  ;;  %v302_v4 = vmul.f32 0.17677669, %v300_v2  ;;  %v303_v6 = vmul.f32 0.17677669, %v301_v5  ;;  %308 = vst.msk [vmem:[#allocation3] sm:$0xff] %vm307_vm2, %v1200_v9  ;;  %309 = vst.msk [vmem:[#allocation3 + $0x8] sm:$0xff] %vm307_vm2, %v1200_v9 }
  0x7b   : > { %902 = vmatpush3.xpose.msk.msra.mxu0 %vm304_vm0, %v316_v1  ;;  %907 = vmatpush3.xpose.msk.msra.mxu1 %vm304_vm0, %v317_v3  ;;  %310 = vst.msk [vmem:[#allocation4] sm:$0xff] %vm307_vm2, %v1198_v0  ;;  %311 = vst.msk [vmem:[#allocation4 + $0x8] sm:$0xff] %vm307_vm2, %v1198_v0  ;;  %vm475_vm3 = vcmask 64512   ;;  %v1201_v16 = vmov 0   ;;  %s263_s18 = scalar_lea.vmem [#allocation11], %s1438_s10  ;;  %s892_s24 = sshll.u32 %s1183_s15, 8 }
  0x7c   : > { %911 = vmatprep.subr.mxu0 %v1198_v0  ;;  %916 = vmatprep.subr.mxu1 %v1198_v0  ;;  %305 = vst.msk [vmem:[#allocation2] sm:$0xff] %vm304_vm0, %v302_v4  ;;  %306 = vst.msk [vmem:[#allocation2 + $0x8] sm:$0xff] %vm304_vm0, %v303_v6  ;;  %v318_v25 = vld [vmem:[%s263_s18] sm:$0xff]  ;;  %v319_v26 = vld [vmem:[%s263_s18 + $0x8] sm:$0xff]  ;;  %s295_s16 = scalar_lea.vmem [#allocation12], %s1438_s10  ;;  %s1487_s30 = scalar_lea.hbm %s1542_s3, %s892_s24 }
  0x7d   : > { %1001 = vset.pattern.permute.xlu1 %v1201_v16  ;;  %1002 = vset.pattern.permute.xlu0 %v1201_v16  ;;  %s725_s20 = sshll.u32 %s295_s16, 4  ;;  %s711_s15 = scalar_lea.sflag [#allocation8], %s1435_s21  ;;  %s1489_s20 = int_to_ptr.vmem [resolvable:$true] %s725_s20 }
  0x7e   : > { %s1105_s6 = scalar_lea.vmem %s1489_s20, 256  ;;  %p1571_p10 = scmp.ne.s32.totalorder %s1557_s25, 0 }
  0x7f   : > { %p1106_p0 = scmp.ne.s32.totalorder %s1489_s20, %s1105_s6  ;;  %s1202_s8 = smov [#allocation12]  }
  0x80   : > { %v521_v51 = vld [vmem:[#allocation5] sm:$0xff]  ;;  %v522_v54 = vld [vmem:[#allocation5 + $0x8] sm:$0xff]  ;;  %s1109_s26 = sshll.u32 %s1202_s8, 4  ;;  %s1110_s26 = int_to_ptr.vmem [resolvable:$false] %s1109_s26 }
  0x81   : > { %v473_v17 = vld [vmem:[#allocation3] sm:$0xff]  ;;  %v474_v20 = vld [vmem:[#allocation3 + $0x8] sm:$0xff]  ;;  %p1107_p8 = pnand %p1106_p0, %p1571_p10  ;;  %s1111_s1 = scalar_lea.vmem %s1110_s26, 512 }
  0x82   : > { %v506_v41 = vld [vmem:[#allocation4] sm:$0xff]  ;;  %v507_v44 = vld [vmem:[#allocation4 + $0x8] sm:$0xff]  ;;  %p1112_p12 = scmp.lt.s32.totalorder %s1489_s20, %s1110_s26  ;;  %p1113_p1 = scmp.lt.s32.totalorder %s1111_s1, %s1105_s6 }
  0x83   : > { %v314_v7 = vld [vmem:[#allocation2] sm:$0xff]  ;;  %v315_v8 = vld [vmem:[#allocation2 + $0x8] sm:$0xff]  ;;  %p1108_p9 = pneg %p1107_p8 }
  0x84   : > { %904 = vmatmul.mubr.msk.f32.vlgmr.msra.gmra.mrb[0].mxu0 %vm304_vm0, %v314_v7  ;;  %909 = vmatmul.mubr.msk.f32.vlgmr.msra.gmra.mrb[0].mxu1 %vm304_vm0, %v315_v8  ;;  %p1114_p6 = por %p1113_p1, %p1112_p12 }
  0x85   : > { %913 = vmatprep.mubr.msk.f32.mxu0 %vm1199_vm1, %v1198_v0  ;;  %918 = vmatprep.mubr.msk.f32.mxu1 %vm1199_vm1, %v1198_v0 }
  0x86   : > { %912 = vmatpush3.msra.mxu0 %v318_v25  ;;  %917 = vmatpush3.msra.mxu1 %v319_v26  ;;  %p1115_p13 = pnand %p1114_p6, %p1108_p9 }
 0x157   : > { %v393_v10 = vpop.f32.mrb[0].mxu0  ;;  %v469_v13 = vpop.f32.mrb[0].mxu1 }
 0x158   : > { %v905_v11 = vpop.f32.mrb[1].mxu0  ;;  %v476_v12 = vsel %vm475_vm3, %v393_v10, -inf  ;;  %v910_v14 = vpop.f32.mrb[1].mxu1  ;;  %v479_v15 = vsel %vm475_vm3, %v469_v13, -inf }
 0x159   : > { %477 = vmax.xlane.f32.xlu0 %v476_v12 }
 0x15d   : > { %480 = vmax.xlane.f32.xlu0 %v479_v15 }
 0x1e6   : > { %v478_v18 = vpop.xlane.xlu0 %477 }
 0x1e7   : > { %v482_v19 = vmax.f32 %v473_v17, %v478_v18 }
 0x1e9   : > { %v484_v21 = vsub.f32 %v473_v17, %v482_v19  ;;  %685 = vst.msk [vmem:[#allocation3] sm:$0xff] %vm307_vm2, %v482_v19  ;;  %492 = vperm.xlu1 %1001, %v482_v19  }
 0x1ea   : > { %v481_v22 = vpop.xlane.xlu0 %480 }
 0x1eb   : > { %v483_v23 = vmax.f32 %v474_v20, %v481_v22  ;;  %v486_v38 = vmul.f32 1.442695, %v484_v21 }
 0x1ed   : > { %v485_v24 = vsub.f32 %v474_v20, %v483_v23  ;;  %686 = vst.msk [vmem:[#allocation3 + $0x8] sm:$0xff] %vm307_vm2, %v483_v23  ;;  %497 = vperm.xlu1 %1001, %v483_v23  }
 0x1ef   : > { %v488_v37 = vmul.f32 1.442695, %v485_v24 }
 0x268   : > { %v493_v27 = vpop.permute.xlu1 %492 }
 0x269   : > { %v500_v28 = vsub.f32 %v393_v10, %v493_v27 }
 0x26b   : > { %v502_v29 = vmul.f32 1.442695, %v500_v28 }
 0x26c   : > { %v498_v30 = vpop.permute.xlu1 %497 }
 0x26d   : > { %1003 = vpow2.f32 %v502_v29  ;;  %v501_v31 = vsub.f32 %v469_v13, %v498_v30 }
 0x26f   : > { %v504_v32 = vmul.f32 1.442695, %v501_v31 }
 0x271   : > { %1005 = vpow2.f32 %v504_v32 }
 0x272   : > { %1007 = vpow2.f32 %v488_v37 }
 0x273   : > { %1009 = vpow2.f32 %v486_v38 }
 0x277   : > { %v1004_v33 = vpop.eup %1003 }
 0x278   : > { %914 = vmatmul.mubr.msk.f32.vlgmr.msra.gmra.mrb[2].mxu0 %vm475_vm3, %v1004_v33  ;;  %v510_v34 = vsel %vm475_vm3, %v1004_v33, 0.0 }
 0x279   : > { %511 = vadd.xlane.f32.xlu0 %v510_v34 }
 0x27b   : > { %v1006_v35 = vpop.eup %1005 }
 0x27c   : > { %919 = vmatmul.mubr.msk.f32.vlgmr.msra.gmra.mrb[2].mxu1 %vm475_vm3, %v1006_v35  ;;  %v513_v36 = vsel %vm475_vm3, %v1006_v35, 0.0  ;;  %v1008_v39 = vpop.eup %1007 }
 0x27d   : > { %514 = vadd.xlane.f32.xlu1 %v513_v36  ;;  %v1010_v40 = vpop.eup %1009  ;;  %v509_v46 = vmul.f32 %v1008_v39, %v507_v44 }
 0x27e   : > { %v508_v42 = vmul.f32 %v1010_v40, %v506_v41 }
 0x28e   : > { %530 = vperm.xlu1 %1001, %v1008_v39  }
 0x28f   : > { %525 = vperm.xlu0 %1002, %v1010_v40  }
 0x306   : > { %v512_v43 = vpop.xlane.xlu0 %511 }
 0x307   : > { %v516_v45 = vadd.f32 %v512_v43, %v508_v42 }
 0x309   : > { %519 = vst.msk [vmem:[#allocation4] sm:$0xff] %vm307_vm2, %v516_v45 }
 0x30a   : > { %v515_v47 = vpop.xlane.xlu1 %514 }
 0x30b   : > { %v517_v48 = vadd.f32 %v515_v47, %v509_v46 }
 0x30d   : > { %520 = vst.msk [vmem:[#allocation4 + $0x8] sm:$0xff] %vm307_vm2, %v517_v48 }
 0x30e   : > { %v526_v52 = vpop.permute.xlu0 %525  ;;  %v531_v55 = vpop.permute.xlu1 %530 }
 0x30f   : > { %v533_v53 = vmul.f32 %v526_v52, %v521_v51  ;;  %v534_v59 = vmul.f32 %v531_v55, %v522_v54 }
 0x310   : > { %v690_v49 = vld [vmem:[#allocation4] sm:$0xff] }
 0x311   : > { %696 = vperm.xlu0 %1002, %v690_v49  }
 0x314   : > { %v691_v50 = vld [vmem:[#allocation4 + $0x8] sm:$0xff] }
 0x315   : > { %701 = vperm.xlu0 %1002, %v691_v50  }
 0x34b   : > { %v604_v56 = vpop.f32.mrb[2].mxu0 }
 0x34c   : > { %v681_v57 = vadd.f32 %v604_v56, %v533_v53  ;;  %v915_v58 = vpop.f32.mrb[3].mxu0 }
 0x34e   : > { %683 = vst.msk [vmem:[#allocation5] sm:$0xff] %vm304_vm0, %v681_v57 }
 0x34f   : > { %v677_v60 = vpop.f32.mrb[2].mxu1 }
 0x350   : > { %v682_v61 = vadd.f32 %v677_v60, %v534_v59  ;;  %v920_v62 = vpop.f32.mrb[3].mxu1 }
 0x352   : > { %684 = vst.msk [vmem:[#allocation5 + $0x8] sm:$0xff] %vm304_vm0, %v682_v61 }
 0x355   : > { %v692_v2 = vld [vmem:[#allocation5] sm:$0xff] }
 0x359   : > { %v693_v5 = vld [vmem:[#allocation5 + $0x8] sm:$0xff] }
 0x390   : > { %v697_v63 = vpop.permute.xlu0 %696 }
 0x391   : > { %1011 = vrcp.f32 %v697_v63 }
 0x394   : > { %v702_v0 = vpop.permute.xlu0 %701 }
 0x395   : > { %1013 = vrcp.f32 %v702_v0 }
 0x39b   : > { %v1012_v1 = vpop.eup %1011 }
 0x39c   : > { %v705_v3 = vmul.f32 %v1012_v1, %v692_v2 }
 0x39e   : > { %708 = vst.msk [vmem:[%s295_s16] sm:$0xff] %vm304_vm0, %v705_v3 }
 0x39f   : > { %v1014_v4 = vpop.eup %1013 }
 0x3a0   : > { %v707_v6 = vmul.f32 %v1014_v4, %v693_v5 }
 0x3a2   : > { %709 = vst.msk [vmem:[%s295_s16 + $0x8] sm:$0xff] %vm304_vm0, %v707_v6 }
 0x3a3   : > { %1118 = shalt.err (!%p1115_p13)
}
 0x3a4   : > { %s1119_s28 = scalar_lea.hbm %s1487_s30, 256  ;;  %s1123_s10 = scalar_lea.hbm %s1542_s3, 512 }
 0x3a5   : > { %p1120_p11 = scmp.ne.s32.totalorder %s1487_s30, %s1119_s28  ;;  %p1124_p7 = scmp.lt.u32.totalorder %s1487_s30, %s1542_s3 }
 0x3a6   : > { %p1125_p4 = scmp.lt.u32.totalorder %s1123_s10, %s1119_s28  ;;  %p1127_p0 = scmp.lt.u32.totalorder %s1119_s28, %s1487_s30 }
 0x3a7   : > { %p1121_p2 = pnand %p1120_p11, %p1571_p10 }
 0x3a8   : > { %p1126_p3 = por %p1125_p4, %p1124_p7 }
 0x3a9   : > { %p1122_p5 = pneg %p1121_p2 }
 0x3aa   : > { %p1128_p8 = por %p1127_p0, %p1126_p3 }
 0x3ac   : > { %p1129_p9 = pnand %p1128_p8, %p1122_p5 }
 0x3ae   : > { %1132 = shalt.err (!%p1129_p9)
}
 0x3af   : > { %s1203_s11 = smov 128   ;;  %s1204_s19 = smov 8  }
 0x3b0   : > { %927 = dma.vmem_to_hbm [thread:$0]  (%p1571_p10), %s1489_s20, 256, %s1487_s30, %s711_s15, %s1203_s11, %s1203_s11, %s1204_s19  }
 0x3b1 PF: > { %s740_s9 = sand.u32 1, %s1171_s12   ;;  %p1572_p12 = scmp.ne.s32.totalorder %s1559_s27, 0 }
 0x3b2   : > { %p1573_p1 = scmp.ge.s32.totalorder %s1191_s17, 2  ;;  %s741_s18 = scalar_lea.sflag [#allocation8], %s740_s9 }
 0x3b4   : > { %p940_p6 = pnand %p1573_p1, %p1572_p12 }
 0x3b6   : > { %1166 = dma.done.wait (!%p940_p6), %s741_s18, 256  }
 0x3b7   : > { %1168 = vsyncadd (!%p940_p6), %s741_s18, 4294967040  ;;  %s22_s17 = sadd.s32 1, %s1191_s17   ;;  %s1574_s24 = sld [smem:[#allocation18_spill]] }
 0x3b8   : > { %p19_p13 = scmp.ge.s32.totalorder %s22_s17, 4   ;;  %s1575_s15 = sld [smem:[#allocation16_spill]] }
 0x3b9   : > { %s1576_s16 = sld [smem:[#allocation17_spill]]  ;;  %s1577_s12 = smov %s1175_s13 }
 0x3ba   : > { %s1578_s13 = smov %s1179_s14  ;;  %21 = sbr.rel (!%p19_p13) target bundleno = 10 (0xa), region = 109 }
 0x3bd   : > { %s1579_s14 = smov %s1574_s24 }
 0x3c1   :  { %746 = vsyncpa [#allocation7], 1 }
 0x3c2   :  { %748 = vsyncpa [#allocation7 + $0x1], 1 }
 0x3c3   :  { %749 = vsyncpa [#allocation10], 1 }
 0x3c4   :  { %751 = vsyncpa [#allocation10 + $0x1], 1 }
 0x3c5   :  { %752 = vsyncpa [#allocation8], 1 }
 0x3c6   :  { %754 = vsyncpa [#allocation8 + $0x1], 1 }

</bundles_post_ra>
